<compile_context>
chip_gen: v7x
topology: tpu7x:2x2x1
jax: 0.10.0
libtpu: 0.0.40
codegen_flags: <defaults>
</compile_context>

<pallas_src>
import jax
import jax.numpy as jnp
from jax.experimental import pallas as pl
from jax.experimental.pallas import tpu as pltpu

_LANE = 128
_SUBLANE = 8


def _round_up(x, m):
    return -(-x // m) * m


def _choose_block_b(B, D):
    """Pick a batch tile from the VMEM budget (f32, lane padding included)."""
    # Per-row VMEM bytes: x row padded to >=128 lanes + output column padded to 128.
    row_bytes = 4 * (max(D, _LANE) + _LANE)
    target_bytes = 6 << 20  # ~6 MiB per pipeline buffer set (x + out)
    blk = target_bytes // row_bytes
    if blk >= _LANE:
        blk = (blk // _LANE) * _LANE
    else:
        blk = max(_SUBLANE, (blk // _SUBLANE) * _SUBLANE)
    # Keep >= ~8 grid steps for big batches so the pipeline overlaps DMA with
    # compute and both v7x TensorCores get work.
    if B >= 8 * _LANE:
        blk = min(blk, max(_LANE, _round_up(pl.cdiv(B, 8), _LANE)))
    # Never exceed the (sublane-padded) batch.
    blk = min(blk, _round_up(B, _SUBLANE))
    return max(_SUBLANE, blk)


def mlp_kernel(x_ref, w_ref, b_ref, o_ref):
    # x_ref: (block_b, D) VMEM   w_ref: (1, D) VMEM   b_ref: (1,) SMEM
    # o_ref: (block_b, 1) VMEM
    x = x_ref[...].astype(jnp.float32)
    w = w_ref[...].astype(jnp.float32)             # (1, D), broadcasts over rows
    z = jnp.sum(x * w, axis=-1, keepdims=True)     # VPU multiply + XLU lane reduce
    z = z + b_ref[0]                               # scalar bias from SMEM
    e = jnp.exp(-z)                                # EUP
    sig = pl.reciprocal(1.0 + e, approx=True)      # divide on the EUP slot
    o_ref[...] = sig.astype(o_ref.dtype)


def mlp_forward(x, weight, bias, *, block_b=None):
    """sigmoid(x @ weight.T + bias).

    x:      [B, D] float32 (PyTorch [N, in_features])
    weight: nn.Linear.weight, shape [1, D] (also accepts [D, 1] or [D])
    bias:   nn.Linear.bias, shape [1]
    returns [B, 1] float32
    """
    B, D = x.shape
    w_row = weight.reshape(1, D).astype(x.dtype)
    b1 = bias.reshape(1).astype(jnp.float32)

    if block_b is None:
        block_b = _choose_block_b(B, D)
    block_b = max(_SUBLANE,
                  _round_up(min(block_b, _round_up(B, _SUBLANE)), _SUBLANE))

    grid = pl.cdiv(B, block_b)
    B_pad = grid * block_b
    x_p = x if B_pad == B else jnp.pad(x, ((0, B_pad - B), (0, 0)))

    # Explicit scoped-VMEM budget: 2 pipeline buffers for x and out + weights + slack.
    x_blk_bytes = block_b * max(D, _LANE) * 4
    o_blk_bytes = block_b * _LANE * 4              # (block_b, 1) lane-pads to 128
    w_bytes = _SUBLANE * max(D, _LANE) * 4
    vmem_limit = int(min(max(2 * (x_blk_bytes + o_blk_bytes + w_bytes) + (4 << 20),
                             16 << 20),
                         48 << 20))                # stay under v7x's 64 MiB physical

    out = pl.pallas_call(
        mlp_kernel,
        out_shape=jax.ShapeDtypeStruct((B_pad, 1), x.dtype),
        grid_spec=pltpu.PrefetchScalarGridSpec(
            num_scalar_prefetch=0,
            grid=(grid,),
            in_specs=[
                pl.BlockSpec((block_b, D), lambda i: (i, 0)),
                pl.BlockSpec((1, D), lambda i: (0, 0)),
                pl.BlockSpec(memory_space=pltpu.MemorySpace.SMEM),
            ],
            out_specs=pl.BlockSpec((block_b, 1), lambda i: (i, 0)),
        ),
        compiler_params=pltpu.CompilerParams(
            dimension_semantics=("parallel",),
            vmem_limit_bytes=vmem_limit,
        ),
        cost_estimate=pl.CostEstimate(
            flops=2 * B_pad * D,
            transcendentals=B_pad,
            bytes_accessed=4 * (B_pad * D + D + B_pad + 1),
        ),
    )(x_p, w_row, b1)

    return out[:B]


if __name__ == "__main__":
    key = jax.random.PRNGKey(0)
    kx, kw, kb, kx2, kw2, kb2 = jax.random.split(key, 6)

    # Small shapes consistent with MLP(n_inputs=32) on a batch of 8.
    batch, n_inputs = 8, 32
    bound = 1.0 / jnp.sqrt(jnp.float32(n_inputs))
    w = jax.random.uniform(kw, (1, n_inputs), jnp.float32, -bound, bound)  # nn.Linear.weight
    b = jax.random.uniform(kb, (1,), jnp.float32, -bound, bound)           # nn.Linear.bias
    x = jax.random.normal(kx, (batch, n_inputs), jnp.float32)

    out = mlp_forward(x, w, b)
    jax.block_until_ready(out)
    ref = jax.nn.sigmoid(x @ w.T + b)
    assert out.shape == (batch, 1)
    # Tolerance covers the EUP approx-reciprocal (~2^-12 relative) in the sigmoid.
    assert jnp.allclose(out, ref, atol=2e-3, rtol=2e-3), float(jnp.max(jnp.abs(out - ref)))

    # Second case: ragged batch + multi-step "parallel" grid (exercises padding path).
    batch2, n_inputs2 = 2050, 256
    bound2 = 1.0 / jnp.sqrt(jnp.float32(n_inputs2))
    w2 = jax.random.uniform(kw2, (1, n_inputs2), jnp.float32, -bound2, bound2)
    b2 = jax.random.uniform(kb2, (1,), jnp.float32, -bound2, bound2)
    x2 = jax.random.normal(kx2, (batch2, n_inputs2), jnp.float32)

    out2 = mlp_forward(x2, w2, b2)
    jax.block_until_ready(out2)
    ref2 = jax.nn.sigmoid(x2 @ w2.T + b2)
    assert out2.shape == (batch2, 1)
    assert jnp.allclose(out2, ref2, atol=2e-3, rtol=2e-3), float(jnp.max(jnp.abs(out2 - ref2)))

    print("KERNEL_OK")
</pallas_src>

<mosaic_0001>
module attributes {stable_mosaic.version = 11 : i64} {
  func.func @mlp_kernel(%arg0: i32, %arg1: memref<8x32xf32, #tpu.memory_space<vmem>>, %arg2: memref<1x32xf32, #tpu.memory_space<vmem>>, %arg3: memref<1xf32, #tpu.memory_space<smem>>, %arg4: memref<8x1xf32, #tpu.memory_space<vmem>>) attributes {dimension_semantics = [#tpu.dimension_semantics<parallel>], iteration_bounds = array<i64: 1>, scalar_prefetch = 0 : i64, scratch_operands = 0 : i64, tpu.core_type = #tpu.core_type<tc>, window_params = [{transform_indices = @transform_0, window_bounds = array<i64: 8, 32>}, {pipeline_mode = #tpu.pipeline_mode<synchronous>, transform_indices = @transform_1, window_bounds = array<i64: 1, 32>}, {transform_indices = @transform_2, window_bounds = array<i64: 1>}, {transform_indices = @transform_3, window_bounds = array<i64: 8, 1>}]} {
    %c0 = arith.constant 0 : index
    %c0_0 = arith.constant 0 : index
    %0 = vector.load %arg1[%c0, %c0_0] : memref<8x32xf32, #tpu.memory_space<vmem>>, vector<8x32xf32>
    %c0_1 = arith.constant 0 : index
    %c0_2 = arith.constant 0 : index
    %1 = vector.load %arg2[%c0_1, %c0_2] : memref<1x32xf32, #tpu.memory_space<vmem>>, vector<1x32xf32>
    %2 = vector.broadcast %1 : vector<1x32xf32> to vector<8x32xf32>
    %3 = arith.mulf %0, %2 : vector<8x32xf32>
    %cst = arith.constant dense<0.000000e+00> : vector<8xf32>
    %4 = vector.multi_reduction <add>, %3, %cst [1] : vector<8x32xf32> to vector<8xf32>
    %5 = vector.shape_cast %4 : vector<8xf32> to vector<8x1xf32>
    %c0_3 = arith.constant 0 : index
    %6 = memref.load %arg3[%c0_3] : memref<1xf32, #tpu.memory_space<smem>>
    %7 = vector.broadcast %6 : f32 to vector<8x1xf32>
    %8 = arith.addf %5, %7 : vector<8x1xf32>
    %cst_4 = arith.constant 0.000000e+00 : f32
    %9 = vector.broadcast %cst_4 : f32 to vector<8x1xf32>
    %10 = arith.subf %9, %8 : vector<8x1xf32>
    %11 = math.exp %10 : vector<8x1xf32>
    %cst_5 = arith.constant 1.000000e+00 : f32
    %12 = vector.broadcast %cst_5 : f32 to vector<8x1xf32>
    %13 = arith.addf %12, %11 : vector<8x1xf32>
    %14 = tpu.reciprocal %13 {approx = true} : vector<8x1xf32> -> vector<8x1xf32>
    %c0_6 = arith.constant 0 : index
    %c0_7 = arith.constant 0 : index
    %15 = vector.load %arg4[%c0_6, %c0_7] : memref<8x1xf32, #tpu.memory_space<vmem>>, vector<8x1xf32>
    tpu.vector_store %arg4[%c0_6, %c0_7], %14 {strides = array<i32>} : memref<8x1xf32, #tpu.memory_space<vmem>>, vector<8x1xf32>,
    return
  }
  func.func @transform_0(%arg0: i32) -> (i32, i32) {
    %c0_i32 = arith.constant 0 : i32
    %c0_i32_0 = arith.constant 0 : i32
    return %arg0, %c0_i32 : i32, i32
  }
  func.func @transform_1(%arg0: i32) -> (i32, i32) {
    %c0_i32 = arith.constant 0 : i32
    %c0_i32_0 = arith.constant 0 : i32
    %c0_i32_1 = arith.constant 0 : i32
    return %c0_i32, %c0_i32_0 : i32, i32
  }
  func.func @transform_2(%arg0: i32) -> i32 {
    %c0_i32 = arith.constant 0 : i32
    %c0_i32_0 = arith.constant 0 : i32
    return %c0_i32 : i32
  }
  func.func @transform_3(%arg0: i32) -> (i32, i32) {
    %c0_i32 = arith.constant 0 : i32
    %c0_i32_0 = arith.constant 0 : i32
    return %arg0, %c0_i32 : i32, i32
  }
}

</mosaic_0001>

<bundles_post_ra>
// kernel: tpu_custom_call.1
= control target key start
LH: loop header
LB: loop body
LE: loop exit
PB: predicated region body
PF: predicated region fallthrough
CT: control target
= control target key end

     0   :  { %9 = vsyncpa [#allocation4], 0  ;;  %s85_s12 = smov [#allocation3]   ;;  %s127_s0 = inlined_call_operand.hbm [shape: f32[8,32], index: 0, kind: input, shape index: {}]   ;;  %s128_s1 = inlined_call_operand.vmem [shape: f32[1,32], index: 1, kind: input, shape index: {}]   ;;  %s129_s2 = inlined_call_operand.<no memory space> [shape: f32[1], index: 2, kind: input, shape index: {}]   ;;  %s130_s3 = inlined_call_operand.vmem [shape: f32[8,1], index: 3, kind: output, shape index: {}]  }
   0x1   :  { %s16_s13 = sshll.u32 %s85_s12, 4  ;;  %s61_s16 = scalar_lea.hbm %s127_s0, 128  ;;  %s17_s13 = int_to_ptr.vmem [resolvable:$true] %s16_s13 }
   0x2   :  { %p62_p0 = scmp.ne.s32.totalorder %s127_s0, %s61_s16  ;;  %p65_p1 = scmp.lt.u32.totalorder %s61_s16, %s127_s0 }
   0x4   :  { %p67_p2 = pnand %p65_p1, %p62_p0 }
   0x6   :  { %70 = shalt.err (!%p67_p2)
}
   0x7   :  { %s71_s21 = scalar_lea.vmem %s17_s13, 128  ;;  %p76_p4 = scmp.lt.s32.totalorder %s17_s13, %s17_s13 }
   0x8   :  { %p72_p3 = scmp.ne.s32.totalorder %s17_s13, %s71_s21  ;;  %p77_p5 = scmp.lt.s32.totalorder %s71_s21, %s71_s21 }
   0xa   :  { %p78_p6 = por %p77_p5, %p76_p4 }
   0xc   :  { %p79_p7 = pnand %p78_p6, %p72_p3 }
   0xe   :  { %82 = shalt.err (!%p79_p7)
}
   0xf   :  { %19 = dma.hbm_to_vmem [thread:$0]  %s127_s0, 128, %s17_s13, [#allocation4]  }
  0x10   :  { %83 = dma.done.wait [#allocation4], 128  }
  0x11   :  { %84 = vsyncadd [#allocation4], 4294967168  ;;  %v27_v0 = vld [vmem:[#allocation3] sm:$0xff]  ;;  %vm36_vm0 = vcmask 261120   ;;  %v41_v4 = vstv %s129_s2  ;;  %vm48_vm1 = vcmask 7168  }
  0x12   :  { %v55_v1 = vld [vmem:[%s128_s1] ss:$0 sm:$0xff] }
  0x13   :  { %v35_v2 = vmul.f32 %v55_v1, %v27_v0 }
  0x15   :  { %v37_v3 = vsel %vm36_vm0, %v35_v2, 0.0 }
  0x16   :  { %38 = vadd.xlane.f32.xlu0 %v37_v3 }
  0xa3   :  { %v39_v5 = vpop.xlane.xlu0 %38 }
  0xa4   :  { %v42_v6 = vadd.f32 %v41_v4, %v39_v5 }
  0xa6   :  { %v43_v7 = vsub.f32 0.0, %v42_v6 }
  0xa8   :  { %v44_v8 = vmul.f32 1.442695, %v43_v7 }
  0xaa   :  { %57 = vpow2.f32 %v44_v8 }
  0xb4   :  { %v58_v9 = vpop.eup %57 }
  0xb5   :  { %v46_v10 = vadd.f32 1.0, %v58_v9 }
  0xb7   :  { %59 = vrcp.f32 %v46_v10 }
  0xc1   :  { %v60_v11 = vpop.eup %59 }
  0xc2   :  { %49 = vst.msk [vmem:[%s130_s3] sm:$0xff] %vm48_vm1, %v60_v11 }
  0xc3   :  { %54 = vsyncpa [#allocation4], 1 }

</bundles_post_ra>
